<compile_context>
chip_gen: v5e
topology: v5e:2x2
jax: 0.10.0
libtpu: 0.0.40
codegen_flags: <defaults>
</compile_context>

<pallas_src>
import functools

import jax
import jax.numpy as jnp
from jax.experimental import pallas as pl
from jax.experimental.pallas import tpu as pltpu


def _round_up(x, m):
    return (x + m - 1) // m * m


# ---------------------------------------------------------------------------
# Pallas kernels
# ---------------------------------------------------------------------------
def _matmul_bias_act_kernel(p_ref, w_ref, b_ref, o_ref, *, slope):
    """(TM, K) bf16 @ (K, N) bf16 -> f32 acc, + bias, optional LeakyReLU."""
    acc = jnp.dot(p_ref[...], w_ref[...], preferred_element_type=jnp.float32)
    acc = acc + b_ref[...]                       # (1, N) broadcasts over rows
    if slope is not None:
        acc = jnp.where(acc > 0, acc, jnp.float32(slope) * acc)
    o_ref[...] = acc.astype(o_ref.dtype)


def _rowdot_bias_kernel(p_ref, w_ref, b_ref, o_ref):
    """C_out == 1 conv: per-row dot product as VPU mul + cross-lane reduce."""
    prod = p_ref[...].astype(jnp.float32) * w_ref[...].astype(jnp.float32)
    acc = jnp.sum(prod, axis=-1, keepdims=True) + b_ref[...]
    o_ref[...] = acc.astype(o_ref.dtype)


# ---------------------------------------------------------------------------
# im2col (pure gather / reshape glue — no arithmetic, stays in bf16)
# ---------------------------------------------------------------------------
# TODO(synk): fuse the patch gather into the kernel (shift-and-matmul over the
# k*k taps with manual/strided loads) to remove the im2col HBM expansion at
# large image sizes; kept as XLA glue here for robustness.
def _im2col(x_nhwc, k, stride, pad):
    x = jnp.pad(x_nhwc, ((0, 0), (pad, pad), (pad, pad), (0, 0)))
    n, h, w, c = x.shape
    ho = (h - k) // stride + 1
    wo = (w - k) // stride + 1
    cols = []
    for di in range(k):
        for dj in range(k):
            cols.append(x[:, di:di + stride * ho:stride,
                          dj:dj + stride * wo:stride, :])
    patches = jnp.stack(cols, axis=3)            # [N, Ho, Wo, k*k, C]
    return patches.reshape(n * ho * wo, k * k * c), (n, ho, wo)


# ---------------------------------------------------------------------------
# Conv2d (PyTorch semantics) via bf16 im2col + tiled Pallas matmul kernel
# ---------------------------------------------------------------------------
def conv2d_pallas(x_nhwc, weight, bias, stride, pad, slope=None,
                  out_dtype=jnp.bfloat16):
    # weight: [C_out, C_in, kH, kW] (PyTorch layout)
    cout, cin, k, _ = weight.shape
    patches, (n, ho, wo) = _im2col(x_nhwc.astype(jnp.bfloat16), k, stride, pad)
    m, kk = patches.shape                        # K is NOT padded to 128

    # Row-tile: big tiles amortize per-step overhead / hit HBM roofline, but
    # never larger than needed; multiple of 16 for bf16 sublane packing.
    tm = min(512, _round_up(m, 16))
    grid = (pl.cdiv(m, tm),)                     # partial last tile is masked

    cparams = pltpu.CompilerParams(
        dimension_semantics=("parallel",),       # shard row tiles on v7x's 2 TCs
        vmem_limit_bytes=32 * 1024 * 1024,       # explicit budget; fits all gens
    )
    b_row = bias.astype(jnp.float32).reshape(1, cout)
    out_isize = jnp.dtype(out_dtype).itemsize

    if cout == 1:
        # Special case: lane-sparse output — use VPU/XLU reduction, not MXU.
        w_row = jnp.transpose(weight, (0, 2, 3, 1)).reshape(1, kk)  # (1, K)
        w_row = w_row.astype(jnp.bfloat16)
        out = pl.pallas_call(
            _rowdot_bias_kernel,
            grid=grid,
            in_specs=[
                pl.BlockSpec((tm, kk), lambda i: (i, 0)),
                pl.BlockSpec((1, kk), lambda i: (0, 0)),
                pl.BlockSpec((1, 1), lambda i: (0, 0)),
            ],
            out_specs=pl.BlockSpec((tm, 1), lambda i: (i, 0)),
            out_shape=jax.ShapeDtypeStruct((m, 1), out_dtype),
            compiler_params=cparams,
            cost_estimate=pl.CostEstimate(
                flops=2 * m * kk,
                transcendentals=0,
                bytes_accessed=int(2 * (m * kk + kk) + 4 + m * out_isize)),
        )(patches, w_row, b_row)
        return out.reshape(n, ho, wo, 1)

    # General path: MXU matmul with fused bias + LeakyReLU.
    w_mat = jnp.transpose(weight, (2, 3, 1, 0)).reshape(kk, cout)   # (K, N)
    w_mat = w_mat.astype(jnp.bfloat16)
    out = pl.pallas_call(
        functools.partial(_matmul_bias_act_kernel, slope=slope),
        grid=grid,
        in_specs=[
            pl.BlockSpec((tm, kk), lambda i: (i, 0)),     # row tile of patches
            pl.BlockSpec((kk, cout), lambda i: (0, 0)),   # weights, replicated
            pl.BlockSpec((1, cout), lambda i: (0, 0)),    # bias, replicated
        ],
        out_specs=pl.BlockSpec((tm, cout), lambda i: (i, 0)),
        out_shape=jax.ShapeDtypeStruct((m, cout), out_dtype),
        compiler_params=cparams,
        cost_estimate=pl.CostEstimate(
            flops=2 * m * kk * cout,
            transcendentals=0,
            bytes_accessed=int(2 * (m * kk + kk * cout) + 4 * cout
                               + m * cout * out_isize)),
    )(patches, w_mat, b_row)
    return out.reshape(n, ho, wo, cout)


# ---------------------------------------------------------------------------
# PatchDiscriminator parameters (deterministic init, pix2pix-style N(0, 0.02))
# ---------------------------------------------------------------------------
def init_params(key):
    shapes = [
        (64, 6, 4, 4),     # conv1
        (128, 64, 4, 4),   # conv2
        (1, 128, 4, 4),    # conv3
    ]
    params = []
    for i, s in enumerate(shapes):
        kw, kb = jax.random.split(jax.random.fold_in(key, i))
        w = 0.02 * jax.random.normal(kw, s, dtype=jnp.float32)
        b = 0.02 * jax.random.normal(kb, (s[0],), dtype=jnp.float32)
        params.append((w, b))
    return params


# ---------------------------------------------------------------------------
# PatchDiscriminator forward: cat([x, y], dim=1) -> 3 convs (LeakyReLU 0.2)
# Inputs x, y: NCHW [N, 3, H, W]; output NCHW [N, 1, H/4-1, W/4-1] (f32)
# ---------------------------------------------------------------------------
def patch_discriminator(params, x_nchw, y_nchw):
    z = jnp.concatenate([x_nchw, y_nchw], axis=1)            # [N, 6, H, W]
    z = jnp.transpose(z, (0, 2, 3, 1)).astype(jnp.bfloat16)  # NCHW -> NHWC bf16
    (w1, b1), (w2, b2), (w3, b3) = params
    z = conv2d_pallas(z, w1, b1, stride=2, pad=1, slope=0.2)                 # bf16
    z = conv2d_pallas(z, w2, b2, stride=2, pad=1, slope=0.2)                 # bf16
    z = conv2d_pallas(z, w3, b3, stride=1, pad=1, slope=None,
                      out_dtype=jnp.float32)                                 # f32
    return jnp.transpose(z, (0, 3, 1, 2))                    # NHWC -> NCHW


# ---------------------------------------------------------------------------
# Reference (plain XLA) with the same dtype policy (bf16 ops, f32 accumulate)
# ---------------------------------------------------------------------------
def _ref_forward(params, x_nchw, y_nchw):
    z = jnp.concatenate([x_nchw, y_nchw], axis=1).astype(jnp.bfloat16)
    strides = [(2, 2), (2, 2), (1, 1)]
    for i, (w, b) in enumerate(params):
        dn = jax.lax.conv_dimension_numbers(z.shape, w.shape,
                                            ("NCHW", "OIHW", "NCHW"))
        z = jax.lax.conv_general_dilated(
            z, w.astype(jnp.bfloat16), strides[i], [(1, 1), (1, 1)],
            dimension_numbers=dn, preferred_element_type=jnp.float32)
        z = z + b.reshape(1, -1, 1, 1).astype(jnp.float32)
        if i < 2:
            z = jnp.where(z > 0, z, 0.2 * z).astype(jnp.bfloat16)
    return z


if __name__ == "__main__":
    key = jax.random.PRNGKey(0)
    kx, ky, kp = jax.random.split(key, 3)
    x = jax.random.normal(kx, (2, 3, 16, 16), dtype=jnp.float32)
    y = jax.random.normal(ky, (2, 3, 16, 16), dtype=jnp.float32)
    params = init_params(kp)

    fwd = jax.jit(patch_discriminator)
    out = jax.block_until_ready(fwd(params, x, y))
    ref = jax.block_until_ready(_ref_forward(params, x, y))

    assert out.shape == (2, 1, 3, 3), out.shape
    err = float(jnp.max(jnp.abs(out - ref)))
    assert err < 2e-2, err
    print("KERNEL_OK")
</pallas_src>

<mosaic_0001>
module attributes {stable_mosaic.version = 11 : i64} {
  func.func @_matmul_bias_act_kernel(%arg0: i32, %arg1: memref<128x96xbf16, #tpu.memory_space<vmem>>, %arg2: memref<96x64xbf16, #tpu.memory_space<vmem>>, %arg3: memref<1x64xf32, #tpu.memory_space<vmem>>, %arg4: memref<128x64xbf16, #tpu.memory_space<vmem>>) attributes {dimension_semantics = [#tpu.dimension_semantics<parallel>], iteration_bounds = array<i64: 1>, scalar_prefetch = 0 : i64, scratch_operands = 0 : i64, tpu.core_type = #tpu.core_type<tc>, window_params = [{transform_indices = @transform_0, window_bounds = array<i64: 128, 96>}, {pipeline_mode = #tpu.pipeline_mode<synchronous>, transform_indices = @transform_1, window_bounds = array<i64: 96, 64>}, {pipeline_mode = #tpu.pipeline_mode<synchronous>, transform_indices = @transform_2, window_bounds = array<i64: 1, 64>}, {transform_indices = @transform_3, window_bounds = array<i64: 128, 64>}]} {
    %c0 = arith.constant 0 : index
    %c0_0 = arith.constant 0 : index
    %0 = vector.load %arg1[%c0, %c0_0] : memref<128x96xbf16, #tpu.memory_space<vmem>>, vector<128x96xbf16>
    %c0_1 = arith.constant 0 : index
    %c0_2 = arith.constant 0 : index
    %1 = vector.load %arg2[%c0_1, %c0_2] : memref<96x64xbf16, #tpu.memory_space<vmem>>, vector<96x64xbf16>
    %cst = arith.constant dense<0.000000e+00> : vector<128x64xf32>
    %2 = tpu.matmul %0, %1, %cst {dimension_numbers = #tpu.dot_dimension_numbers<[1], [0], [0], [1], [0, 0, 1, 1], [], []>} : vector<128x96xbf16>, vector<96x64xbf16>, vector<128x64xf32> -> vector<128x64xf32>
    %c0_3 = arith.constant 0 : index
    %c0_4 = arith.constant 0 : index
    %3 = vector.load %arg3[%c0_3, %c0_4] : memref<1x64xf32, #tpu.memory_space<vmem>>, vector<1x64xf32>
    %4 = vector.broadcast %3 : vector<1x64xf32> to vector<128x64xf32>
    %5 = arith.addf %2, %4 : vector<128x64xf32>
    %cst_5 = arith.constant 0.000000e+00 : f32
    %6 = vector.broadcast %cst_5 : f32 to vector<128x64xf32>
    %7 = arith.cmpf ogt, %5, %6 : vector<128x64xf32>
    %cst_6 = arith.constant 2.000000e-01 : f32
    %8 = vector.broadcast %cst_6 : f32 to vector<128x64xf32>
    %9 = arith.mulf %8, %5 : vector<128x64xf32>
    %10 = arith.select %7, %5, %9 : vector<128x64xi1>, vector<128x64xf32>
    %11 = arith.truncf %10 : vector<128x64xf32> to vector<128x64xbf16>
    %c0_7 = arith.constant 0 : index
    %c0_8 = arith.constant 0 : index
    %12 = vector.load %arg4[%c0_7, %c0_8] : memref<128x64xbf16, #tpu.memory_space<vmem>>, vector<128x64xbf16>
    tpu.vector_store %arg4[%c0_7, %c0_8], %11 {strides = array<i32>} : memref<128x64xbf16, #tpu.memory_space<vmem>>, vector<128x64xbf16>,
    return
  }
  func.func @transform_0(%arg0: i32) -> (i32, i32) {
    %c0_i32 = arith.constant 0 : i32
    %c0_i32_0 = arith.constant 0 : i32
    return %arg0, %c0_i32 : i32, i32
  }
  func.func @transform_1(%arg0: i32) -> (i32, i32) {
    %c0_i32 = arith.constant 0 : i32
    %c0_i32_0 = arith.constant 0 : i32
    %c0_i32_1 = arith.constant 0 : i32
    return %c0_i32, %c0_i32_0 : i32, i32
  }
  func.func @transform_2(%arg0: i32) -> (i32, i32) {
    %c0_i32 = arith.constant 0 : i32
    %c0_i32_0 = arith.constant 0 : i32
    %c0_i32_1 = arith.constant 0 : i32
    return %c0_i32, %c0_i32_0 : i32, i32
  }
  func.func @transform_3(%arg0: i32) -> (i32, i32) {
    %c0_i32 = arith.constant 0 : i32
    %c0_i32_0 = arith.constant 0 : i32
    return %arg0, %c0_i32 : i32, i32
  }
}

module attributes {stable_mosaic.version = 11 : i64} {
  func.func @_matmul_bias_act_kernel(%arg0: i32, %arg1: memref<32x1024xbf16, #tpu.memory_space<vmem>>, %arg2: memref<1024x128xbf16, #tpu.memory_space<vmem>>, %arg3: memref<1x128xf32, #tpu.memory_space<vmem>>, %arg4: memref<32x128xbf16, #tpu.memory_space<vmem>>) attributes {dimension_semantics = [#tpu.dimension_semantics<parallel>], iteration_bounds = array<i64: 1>, scalar_prefetch = 0 : i64, scratch_operands = 0 : i64, tpu.core_type = #tpu.core_type<tc>, window_params = [{transform_indices = @transform_0, window_bounds = array<i64: 32, 1024>}, {pipeline_mode = #tpu.pipeline_mode<synchronous>, transform_indices = @transform_1, window_bounds = array<i64: 1024, 128>}, {pipeline_mode = #tpu.pipeline_mode<synchronous>, transform_indices = @transform_2, window_bounds = array<i64: 1, 128>}, {transform_indices = @transform_3, window_bounds = array<i64: 32, 128>}]} {
    %c0 = arith.constant 0 : index
    %c0_0 = arith.constant 0 : index
    %0 = vector.load %arg1[%c0, %c0_0] : memref<32x1024xbf16, #tpu.memory_space<vmem>>, vector<32x1024xbf16>
    %c0_1 = arith.constant 0 : index
    %c0_2 = arith.constant 0 : index
    %1 = vector.load %arg2[%c0_1, %c0_2] : memref<1024x128xbf16, #tpu.memory_space<vmem>>, vector<1024x128xbf16>
    %cst = arith.constant dense<0.000000e+00> : vector<32x128xf32>
    %2 = tpu.matmul %0, %1, %cst {dimension_numbers = #tpu.dot_dimension_numbers<[1], [0], [0], [1], [0, 0, 1, 1], [], []>} : vector<32x1024xbf16>, vector<1024x128xbf16>, vector<32x128xf32> -> vector<32x128xf32>
    %c0_3 = arith.constant 0 : index
    %c0_4 = arith.constant 0 : index
    %3 = vector.load %arg3[%c0_3, %c0_4] : memref<1x128xf32, #tpu.memory_space<vmem>>, vector<1x128xf32>
    %4 = vector.broadcast %3 : vector<1x128xf32> to vector<32x128xf32>
    %5 = arith.addf %2, %4 : vector<32x128xf32>
    %cst_5 = arith.constant 0.000000e+00 : f32
    %6 = vector.broadcast %cst_5 : f32 to vector<32x128xf32>
    %7 = arith.cmpf ogt, %5, %6 : vector<32x128xf32>
    %cst_6 = arith.constant 2.000000e-01 : f32
    %8 = vector.broadcast %cst_6 : f32 to vector<32x128xf32>
    %9 = arith.mulf %8, %5 : vector<32x128xf32>
    %10 = arith.select %7, %5, %9 : vector<32x128xi1>, vector<32x128xf32>
    %11 = arith.truncf %10 : vector<32x128xf32> to vector<32x128xbf16>
    %c0_7 = arith.constant 0 : index
    %c0_8 = arith.constant 0 : index
    %12 = vector.load %arg4[%c0_7, %c0_8] : memref<32x128xbf16, #tpu.memory_space<vmem>>, vector<32x128xbf16>
    tpu.vector_store %arg4[%c0_7, %c0_8], %11 {strides = array<i32>} : memref<32x128xbf16, #tpu.memory_space<vmem>>, vector<32x128xbf16>,
    return
  }
  func.func @transform_0(%arg0: i32) -> (i32, i32) {
    %c0_i32 = arith.constant 0 : i32
    %c0_i32_0 = arith.constant 0 : i32
    return %arg0, %c0_i32 : i32, i32
  }
  func.func @transform_1(%arg0: i32) -> (i32, i32) {
    %c0_i32 = arith.constant 0 : i32
    %c0_i32_0 = arith.constant 0 : i32
    %c0_i32_1 = arith.constant 0 : i32
    return %c0_i32, %c0_i32_0 : i32, i32
  }
  func.func @transform_2(%arg0: i32) -> (i32, i32) {
    %c0_i32 = arith.constant 0 : i32
    %c0_i32_0 = arith.constant 0 : i32
    %c0_i32_1 = arith.constant 0 : i32
    return %c0_i32, %c0_i32_0 : i32, i32
  }
  func.func @transform_3(%arg0: i32) -> (i32, i32) {
    %c0_i32 = arith.constant 0 : i32
    %c0_i32_0 = arith.constant 0 : i32
    return %arg0, %c0_i32 : i32, i32
  }
}

module attributes {stable_mosaic.version = 11 : i64} {
  func.func @_rowdot_bias_kernel(%arg0: i32, %arg1: memref<32x2048xbf16, #tpu.memory_space<vmem>>, %arg2: memref<1x2048xbf16, #tpu.memory_space<vmem>>, %arg3: memref<1x1xf32, #tpu.memory_space<vmem>>, %arg4: memref<32x1xf32, #tpu.memory_space<vmem>>) attributes {dimension_semantics = [#tpu.dimension_semantics<parallel>], iteration_bounds = array<i64: 1>, scalar_prefetch = 0 : i64, scratch_operands = 0 : i64, tpu.core_type = #tpu.core_type<tc>, window_params = [{transform_indices = @transform_0, window_bounds = array<i64: 32, 2048>}, {pipeline_mode = #tpu.pipeline_mode<synchronous>, transform_indices = @transform_1, window_bounds = array<i64: 1, 2048>}, {pipeline_mode = #tpu.pipeline_mode<synchronous>, transform_indices = @transform_2, window_bounds = array<i64: 1, 1>}, {transform_indices = @transform_3, window_bounds = array<i64: 32, 1>}]} {
    %c0 = arith.constant 0 : index
    %c0_0 = arith.constant 0 : index
    %0 = vector.load %arg1[%c0, %c0_0] : memref<32x2048xbf16, #tpu.memory_space<vmem>>, vector<32x2048xbf16>
    %1 = arith.extf %0 : vector<32x2048xbf16> to vector<32x2048xf32>
    %c0_1 = arith.constant 0 : index
    %c0_2 = arith.constant 0 : index
    %2 = vector.load %arg2[%c0_1, %c0_2] : memref<1x2048xbf16, #tpu.memory_space<vmem>>, vector<1x2048xbf16>
    %3 = arith.extf %2 : vector<1x2048xbf16> to vector<1x2048xf32>
    %4 = vector.broadcast %3 : vector<1x2048xf32> to vector<32x2048xf32>
    %5 = arith.mulf %1, %4 : vector<32x2048xf32>
    %cst = arith.constant dense<0.000000e+00> : vector<32xf32>
    %6 = vector.multi_reduction <add>, %5, %cst [1] : vector<32x2048xf32> to vector<32xf32>
    %7 = vector.shape_cast %6 : vector<32xf32> to vector<32x1xf32>
    %c0_3 = arith.constant 0 : index
    %c0_4 = arith.constant 0 : index
    %8 = vector.load %arg3[%c0_3, %c0_4] : memref<1x1xf32, #tpu.memory_space<vmem>>, vector<1x1xf32>
    %9 = vector.broadcast %8 : vector<1x1xf32> to vector<32x1xf32>
    %10 = arith.addf %7, %9 : vector<32x1xf32>
    %c0_5 = arith.constant 0 : index
    %c0_6 = arith.constant 0 : index
    %11 = vector.load %arg4[%c0_5, %c0_6] : memref<32x1xf32, #tpu.memory_space<vmem>>, vector<32x1xf32>
    tpu.vector_store %arg4[%c0_5, %c0_6], %10 {strides = array<i32>} : memref<32x1xf32, #tpu.memory_space<vmem>>, vector<32x1xf32>,
    return
  }
  func.func @transform_0(%arg0: i32) -> (i32, i32) {
    %c0_i32 = arith.constant 0 : i32
    %c0_i32_0 = arith.constant 0 : i32
    return %arg0, %c0_i32 : i32, i32
  }
  func.func @transform_1(%arg0: i32) -> (i32, i32) {
    %c0_i32 = arith.constant 0 : i32
    %c0_i32_0 = arith.constant 0 : i32
    %c0_i32_1 = arith.constant 0 : i32
    return %c0_i32, %c0_i32_0 : i32, i32
  }
  func.func @transform_2(%arg0: i32) -> (i32, i32) {
    %c0_i32 = arith.constant 0 : i32
    %c0_i32_0 = arith.constant 0 : i32
    %c0_i32_1 = arith.constant 0 : i32
    return %c0_i32, %c0_i32_0 : i32, i32
  }
  func.func @transform_3(%arg0: i32) -> (i32, i32) {
    %c0_i32 = arith.constant 0 : i32
    %c0_i32_0 = arith.constant 0 : i32
    return %arg0, %c0_i32 : i32, i32
  }
}

</mosaic_0001>

<bundles_post_ra>
// kernel: patch_discriminator.3
= control target key start
LH: loop header
LB: loop body
LE: loop exit
PB: predicated region body
PF: predicated region fallthrough
CT: control target
= control target key end

     0   :  { %vm123_vm0 = vcmask 785408   ;;  %vm261_vm3 = vcmask 519168   ;;  %s534_s1 = inlined_call_operand.vmem [shape: bf16[96,64], index: 1, kind: input, shape index: {}]   ;;  %s535_s2 = inlined_call_operand.vmem [shape: f32[1,64], index: 2, kind: input, shape index: {}]   ;;  %s536_s0 = inlined_call_operand.vmem [shape: bf16[128,96], index: 0, kind: input, shape index: {}]   ;;  %s537_s3 = inlined_call_operand.vmem [shape: bf16[128,64], index: 3, kind: output, shape index: {}]  }
   0x1   :  { %v359_v0 = vld [vmem:[%s534_s1 + $0x28] sm:$0xff]  ;;  %v358_v1 = vld [vmem:[%s534_s1 + $0x20] sm:$0xff]  ;;  %v357_v2 = vld [vmem:[%s534_s1 + $0x18] sm:$0xff] }
   0x2   :  { %150 = vmatpush.bf16.msra.mxu0 %v359_v0  ;;  %360 = vmatpush.bf16.msra.mxu1 %v359_v0  ;;  %v356_v3 = vld [vmem:[%s534_s1 + $0x10] sm:$0xff]  ;;  %v355_v4 = vld [vmem:[%s534_s1 + $0x8] sm:$0xff]  ;;  %v354_v5 = vld [vmem:[%s534_s1] sm:$0xff] }
   0x3   :  { %361 = vmatpush.bf16.msra.mxu2 %v359_v0  ;;  %362 = vmatpush.bf16.msra.mxu3 %v359_v0  ;;  %v346_v6 = vld [vmem:[%s536_s0] sm:$0xff]  ;;  %v348_v7 = vld [vmem:[%s536_s0 + $0x10] sm:$0xff]  ;;  %v347_v10 = vld [vmem:[%s536_s0 + $0x8] sm:$0xff] }
   0x4   :  { %v350_v8 = vld [vmem:[%s536_s0 + $0x20] sm:$0xff]  ;;  %v352_v9 = vld [vmem:[%s536_s0 + $0x30] sm:$0xff]  ;;  %v349_v11 = vld [vmem:[%s536_s0 + $0x18] sm:$0xff] }
   0x5   :  { %v351_v12 = vld [vmem:[%s536_s0 + $0x28] sm:$0xff]  ;;  %v353_v13 = vld [vmem:[%s536_s0 + $0x38] sm:$0xff]  ;;  %v452_v14 = vld [vmem:[%s535_s2] ss:$0 sm:$0xff] }
   0x6   :  { %151 = vmatpush.bf16.msra.mxu0 %v358_v1  ;;  %363 = vmatpush.bf16.msra.mxu1 %v358_v1 }
   0x7   :  { %364 = vmatpush.bf16.msra.mxu2 %v358_v1  ;;  %365 = vmatpush.bf16.msra.mxu3 %v358_v1 }
   0xa   :  { %152 = vmatpush.bf16.msra.mxu0 %v357_v2  ;;  %366 = vmatpush.bf16.msra.mxu1 %v357_v2 }
   0xb   :  { %367 = vmatpush.bf16.msra.mxu2 %v357_v2  ;;  %368 = vmatpush.bf16.msra.mxu3 %v357_v2 }
   0xe   :  { %153 = vmatpush.bf16.msra.mxu0 %v356_v3  ;;  %369 = vmatpush.bf16.msra.mxu1 %v356_v3 }
   0xf   :  { %370 = vmatpush.bf16.msra.mxu2 %v356_v3  ;;  %371 = vmatpush.bf16.msra.mxu3 %v356_v3 }
  0x12   :  { %154 = vmatpush.bf16.msra.mxu0 %v355_v4  ;;  %372 = vmatpush.bf16.msra.mxu1 %v355_v4 }
  0x13   :  { %373 = vmatpush.bf16.msra.mxu2 %v355_v4  ;;  %374 = vmatpush.bf16.msra.mxu3 %v355_v4 }
  0x16   :  { %155 = vmatpush.bf16.msra.mxu0 %v354_v5  ;;  %375 = vmatpush.bf16.msra.mxu1 %v354_v5 }
  0x17   :  { %376 = vmatpush.bf16.msra.mxu2 %v354_v5  ;;  %377 = vmatpush.bf16.msra.mxu3 %v354_v5 }
  0x19   :  { %338 = vmatmul.msk.bf16.vlgmr.msra.gmra.mxu0 %vm123_vm0, %v346_v6  ;;  %340 = vmatmul.msk.bf16.vlgmr.msra.gmra.mxu1 %vm123_vm0, %v348_v7 }
  0x1a   :  { %342 = vmatmul.msk.bf16.vlgmr.msra.gmra.mxu2 %vm123_vm0, %v350_v8  ;;  %344 = vmatmul.msk.bf16.vlgmr.msra.gmra.mxu3 %vm123_vm0, %v352_v9 }
  0x29   :  { %339 = vmatmul.msk.bf16.gmra.mxu0 %vm123_vm0, %v347_v10  ;;  %341 = vmatmul.msk.bf16.gmra.mxu1 %vm123_vm0, %v349_v11 }
  0x2a   :  { %343 = vmatmul.msk.bf16.gmra.mxu2 %vm123_vm0, %v351_v12  ;;  %345 = vmatmul.msk.bf16.gmra.mxu3 %vm123_vm0, %v353_v13 }
  0x96   :  { %v157_v15 = vpop.f32.mrf.mxu0  ;;  %v167_v16 = vpop.f32.mrf.mxu1 }
  0x97   :  { %v158_v17 = vadd.f32 %v452_v14, %v157_v15  ;;  %v168_v18 = vadd.f32 %v452_v14, %v167_v16 }
  0x99   :  { %vm197_vm1 = vcmp.gt.f32.partialorder %v158_v17, 0.0  ;;  %v213_v19 = vmul.f32 0.2, %v158_v17  ;;  %vm201_vm2 = vcmp.gt.f32.partialorder %v168_v18, 0.0  ;;  %v217_v20 = vmul.f32 0.2, %v168_v18 }
  0x9b   :  { %v229_v21 = vsel %vm197_vm1, %v158_v17, %v213_v19  ;;  %v233_v22 = vsel %vm201_vm2, %v168_v18, %v217_v20 }
  0x9c   :  { %v245_v23 = vpack.c.bf16 %v229_v21, %v229_v21  ;;  %v249_v24 = vpack.c.bf16 %v233_v22, %v233_v22 }
  0x9d   :  { %v177_v25 = vpop.f32.mrf.mxu2  ;;  %v187_v26 = vpop.f32.mrf.mxu3 }
  0x9e   :  { %262 = vst.msk [vmem:[%s537_s3] sm:$0xf] %vm261_vm3, %v245_v23  ;;  %v178_v27 = vadd.f32 %v452_v14, %v177_v25  ;;  %v188_v28 = vadd.f32 %v452_v14, %v187_v26  ;;  %v159_v29 = vpop.f32.mrf.mxu0  ;;  %v169_v30 = vpop.f32.mrf.mxu1 }
  0x9f   :  { %266 = vst.msk [vmem:[%s537_s3 + $0x10] sm:$0xf] %vm261_vm3, %v249_v24  ;;  %v160_v31 = vadd.f32 %v452_v14, %v159_v29  ;;  %v170_v32 = vadd.f32 %v452_v14, %v169_v30 }
  0xa0   :  { %vm205_vm4 = vcmp.gt.f32.partialorder %v178_v27, 0.0  ;;  %v221_v33 = vmul.f32 0.2, %v178_v27  ;;  %vm209_vm5 = vcmp.gt.f32.partialorder %v188_v28, 0.0  ;;  %v225_v34 = vmul.f32 0.2, %v188_v28 }
  0xa1   :  { %vm198_vm6 = vcmp.gt.f32.partialorder %v160_v31, 0.0  ;;  %v214_v35 = vmul.f32 0.2, %v160_v31  ;;  %vm202_vm7 = vcmp.gt.f32.partialorder %v170_v32, 0.0  ;;  %v218_v36 = vmul.f32 0.2, %v170_v32 }
  0xa2   :  { %v237_v37 = vsel %vm205_vm4, %v178_v27, %v221_v33  ;;  %v241_v38 = vsel %vm209_vm5, %v188_v28, %v225_v34 }
  0xa3   :  { %v253_v39 = vpack.c.bf16 %v237_v37, %v237_v37  ;;  %v257_v40 = vpack.c.bf16 %v241_v38, %v241_v38  ;;  %v230_v41 = vsel %vm198_vm6, %v160_v31, %v214_v35  ;;  %v234_v42 = vsel %vm202_vm7, %v170_v32, %v218_v36 }
  0xa4   :  { %v246_v43 = vpack.c.bf16 %v230_v41, %v230_v41  ;;  %v250_v44 = vpack.c.bf16 %v234_v42, %v234_v42 }
  0xa5   :  { %270 = vst.msk [vmem:[%s537_s3 + $0x20] sm:$0xf] %vm261_vm3, %v253_v39  ;;  %v179_v45 = vpop.f32.mrf.mxu2  ;;  %v189_v46 = vpop.f32.mrf.mxu3 }
  0xa6   :  { %274 = vst.msk [vmem:[%s537_s3 + $0x30] sm:$0xf] %vm261_vm3, %v257_v40  ;;  %v180_v47 = vadd.f32 %v452_v14, %v179_v45  ;;  %v190_v48 = vadd.f32 %v452_v14, %v189_v46  ;;  %v162_v49 = vpop.f32.mrf.mxu0  ;;  %v172_v50 = vpop.f32.mrf.mxu1 }
  0xa7   :  { %263 = vst.msk [vmem:[%s537_s3 + $0x4] sm:$0xf] %vm261_vm3, %v246_v43  ;;  %v163_v51 = vadd.f32 %v452_v14, %v162_v49  ;;  %v173_v52 = vadd.f32 %v452_v14, %v172_v50 }
  0xa8   :  { %267 = vst.msk [vmem:[%s537_s3 + $0x14] sm:$0xf] %vm261_vm3, %v250_v44  ;;  %vm206_vm8 = vcmp.gt.f32.partialorder %v180_v47, 0.0  ;;  %v222_v53 = vmul.f32 0.2, %v180_v47  ;;  %vm210_vm9 = vcmp.gt.f32.partialorder %v190_v48, 0.0 }
  0xa9   :  { %v226_v54 = vmul.f32 0.2, %v190_v48  ;;  %vm199_vm10 = vcmp.gt.f32.partialorder %v163_v51, 0.0  ;;  %v215_v55 = vmul.f32 0.2, %v163_v51  ;;  %vm203_vm11 = vcmp.gt.f32.partialorder %v173_v52, 0.0 }
  0xaa   :  { %v238_v56 = vsel %vm206_vm8, %v180_v47, %v222_v53  ;;  %v219_v57 = vmul.f32 0.2, %v173_v52 }
  0xab   :  { %v254_v58 = vpack.c.bf16 %v238_v56, %v238_v56  ;;  %v242_v59 = vsel %vm210_vm9, %v190_v48, %v226_v54  ;;  %v231_v60 = vsel %vm199_vm10, %v163_v51, %v215_v55 }
  0xac   :  { %v258_v61 = vpack.c.bf16 %v242_v59, %v242_v59  ;;  %v247_v62 = vpack.c.bf16 %v231_v60, %v231_v60  ;;  %v235_v63 = vsel %vm203_vm11, %v173_v52, %v219_v57 }
  0xad   :  { %271 = vst.msk [vmem:[%s537_s3 + $0x24] sm:$0xf] %vm261_vm3, %v254_v58  ;;  %v251_v0 = vpack.c.bf16 %v235_v63, %v235_v63  ;;  %v182_v1 = vpop.f32.mrf.mxu2  ;;  %v192_v2 = vpop.f32.mrf.mxu3 }
  0xae   :  { %275 = vst.msk [vmem:[%s537_s3 + $0x34] sm:$0xf] %vm261_vm3, %v258_v61  ;;  %v183_v3 = vadd.f32 %v452_v14, %v182_v1  ;;  %v193_v4 = vadd.f32 %v452_v14, %v192_v2  ;;  %v164_v5 = vpop.f32.mrf.mxu0  ;;  %v174_v6 = vpop.f32.mrf.mxu1 }
  0xaf   :  { %264 = vst.msk [vmem:[%s537_s3 + $0x8] sm:$0xf] %vm261_vm3, %v247_v62  ;;  %v165_v7 = vadd.f32 %v452_v14, %v164_v5  ;;  %v175_v8 = vadd.f32 %v452_v14, %v174_v6 }
  0xb0   :  { %268 = vst.msk [vmem:[%s537_s3 + $0x18] sm:$0xf] %vm261_vm3, %v251_v0  ;;  %vm207_vm12 = vcmp.gt.f32.partialorder %v183_v3, 0.0  ;;  %v223_v9 = vmul.f32 0.2, %v183_v3  ;;  %vm211_vm13 = vcmp.gt.f32.partialorder %v193_v4, 0.0 }
  0xb1   :  { %v227_v10 = vmul.f32 0.2, %v193_v4  ;;  %vm200_vm14 = vcmp.gt.f32.partialorder %v165_v7, 0.0  ;;  %v216_v11 = vmul.f32 0.2, %v165_v7  ;;  %vm204_vm15 = vcmp.gt.f32.partialorder %v175_v8, 0.0 }
  0xb2   :  { %v239_v12 = vsel %vm207_vm12, %v183_v3, %v223_v9  ;;  %v220_v13 = vmul.f32 0.2, %v175_v8 }
  0xb3   :  { %v255_v15 = vpack.c.bf16 %v239_v12, %v239_v12  ;;  %v243_v16 = vsel %vm211_vm13, %v193_v4, %v227_v10  ;;  %v232_v17 = vsel %vm200_vm14, %v165_v7, %v216_v11 }
  0xb4   :  { %v259_v18 = vpack.c.bf16 %v243_v16, %v243_v16  ;;  %v248_v19 = vpack.c.bf16 %v232_v17, %v232_v17  ;;  %v236_v20 = vsel %vm204_vm15, %v175_v8, %v220_v13 }
  0xb5   :  { %272 = vst.msk [vmem:[%s537_s3 + $0x28] sm:$0xf] %vm261_vm3, %v255_v15  ;;  %v252_v21 = vpack.c.bf16 %v236_v20, %v236_v20  ;;  %v184_v22 = vpop.f32.mrf.mxu2  ;;  %v194_v23 = vpop.f32.mrf.mxu3 }
  0xb6   :  { %276 = vst.msk [vmem:[%s537_s3 + $0x38] sm:$0xf] %vm261_vm3, %v259_v18  ;;  %v185_v24 = vadd.f32 %v452_v14, %v184_v22  ;;  %v195_v25 = vadd.f32 %v452_v14, %v194_v23 }
  0xb7   :  { %265 = vst.msk [vmem:[%s537_s3 + $0xc] sm:$0xf] %vm261_vm3, %v248_v19 }
  0xb8   :  { %269 = vst.msk [vmem:[%s537_s3 + $0x1c] sm:$0xf] %vm261_vm3, %v252_v21  ;;  %vm208_vm0 = vcmp.gt.f32.partialorder %v185_v24, 0.0  ;;  %v224_v26 = vmul.f32 0.2, %v185_v24  ;;  %vm212_vm1 = vcmp.gt.f32.partialorder %v195_v25, 0.0 }
  0xb9   :  { %v228_v27 = vmul.f32 0.2, %v195_v25 }
  0xba   :  { %v240_v28 = vsel %vm208_vm0, %v185_v24, %v224_v26 }
  0xbb   :  { %v256_v29 = vpack.c.bf16 %v240_v28, %v240_v28  ;;  %v244_v30 = vsel %vm212_vm1, %v195_v25, %v228_v27 }
  0xbc   :  { %v260_v31 = vpack.c.bf16 %v244_v30, %v244_v30 }
  0xbd   :  { %273 = vst.msk [vmem:[%s537_s3 + $0x2c] sm:$0xf] %vm261_vm3, %v256_v29 }
  0xbe   :  { %277 = vst.msk [vmem:[%s537_s3 + $0x3c] sm:$0xf] %vm261_vm3, %v260_v31 }

// kernel: patch_discriminator.4
= control target key start
LH: loop header
LB: loop body
LE: loop exit
PB: predicated region body
PF: predicated region fallthrough
CT: control target
= control target key end

     0   :  { %s1531_s1 = inlined_call_operand.vmem [shape: bf16[1024,128], index: 1, kind: input, shape index: {}]   ;;  %s1532_s0 = inlined_call_operand.vmem [shape: bf16[32,1024], index: 0, kind: input, shape index: {}]   ;;  %s1533_s2 = inlined_call_operand.vmem [shape: f32[1,128], index: 2, kind: input, shape index: {}]   ;;  %s1534_s3 = inlined_call_operand.vmem [shape: bf16[32,128], index: 3, kind: output, shape index: {}]  }
   0x1   :  { %v1145_v0 = vld [vmem:[%s1531_s1 + $0x38] sm:$0xff]  ;;  %v1144_v4 = vld [vmem:[%s1531_s1 + $0x30] sm:$0xff]  ;;  %v1143_v8 = vld [vmem:[%s1531_s1 + $0x28] sm:$0xff] }
   0x2   :  { %v1153_v1 = vld [vmem:[%s1531_s1 + $0x78] sm:$0xff]  ;;  %626 = vmatpush.bf16.msra.mxu0 %v1145_v0  ;;  %v1152_v5 = vld [vmem:[%s1531_s1 + $0x70] sm:$0xff]  ;;  %v1151_v9 = vld [vmem:[%s1531_s1 + $0x68] sm:$0xff] }
   0x3   :  { %v1161_v2 = vld [vmem:[%s1531_s1 + $0xb8] sm:$0xff]  ;;  %645 = vmatpush.bf16.msra.mxu1 %v1153_v1  ;;  %v1160_v6 = vld [vmem:[%s1531_s1 + $0xb0] sm:$0xff]  ;;  %v1159_v10 = vld [vmem:[%s1531_s1 + $0xa8] sm:$0xff] }
   0x4   :  { %v1169_v3 = vld [vmem:[%s1531_s1 + $0xf8] sm:$0xff]  ;;  %664 = vmatpush.bf16.msra.mxu2 %v1161_v2  ;;  %v1168_v7 = vld [vmem:[%s1531_s1 + $0xf0] sm:$0xff]  ;;  %v1167_v11 = vld [vmem:[%s1531_s1 + $0xe8] sm:$0xff] }
   0x5   :  { %683 = vmatpush.bf16.msra.mxu3 %v1169_v3  ;;  %v1142_v12 = vld [vmem:[%s1531_s1 + $0x20] sm:$0xff]  ;;  %v1141_v16 = vld [vmem:[%s1531_s1 + $0x18] sm:$0xff]  ;;  %v1140_v20 = vld [vmem:[%s1531_s1 + $0x10] sm:$0xff] }
   0x6   :  { %627 = vmatpush.bf16.msra.mxu0 %v1144_v4  ;;  %v1150_v13 = vld [vmem:[%s1531_s1 + $0x60] sm:$0xff]  ;;  %v1149_v17 = vld [vmem:[%s1531_s1 + $0x58] sm:$0xff]  ;;  %v1148_v21 = vld [vmem:[%s1531_s1 + $0x50] sm:$0xff] }
   0x7   :  { %646 = vmatpush.bf16.msra.mxu1 %v1152_v5  ;;  %v1158_v14 = vld [vmem:[%s1531_s1 + $0xa0] sm:$0xff]  ;;  %v1157_v18 = vld [vmem:[%s1531_s1 + $0x98] sm:$0xff]  ;;  %v1156_v22 = vld [vmem:[%s1531_s1 + $0x90] sm:$0xff] }
   0x8   :  { %665 = vmatpush.bf16.msra.mxu2 %v1160_v6  ;;  %v1166_v15 = vld [vmem:[%s1531_s1 + $0xe0] sm:$0xff]  ;;  %v1165_v19 = vld [vmem:[%s1531_s1 + $0xd8] sm:$0xff]  ;;  %v1164_v23 = vld [vmem:[%s1531_s1 + $0xd0] sm:$0xff] }
   0x9   :  { %684 = vmatpush.bf16.msra.mxu3 %v1168_v7  ;;  %v1139_v24 = vld [vmem:[%s1531_s1 + $0x8] sm:$0xff]  ;;  %v1138_v28 = vld [vmem:[%s1531_s1] sm:$0xff]  ;;  %v1193_v40 = vld [vmem:[%s1531_s1 + $0x1b8] sm:$0xff] }
   0xa   :  { %628 = vmatpush.bf16.msra.mxu0 %v1143_v8  ;;  %v1147_v25 = vld [vmem:[%s1531_s1 + $0x48] sm:$0xff]  ;;  %v1146_v29 = vld [vmem:[%s1531_s1 + $0x40] sm:$0xff]  ;;  %v1177_v41 = vld [vmem:[%s1531_s1 + $0x138] sm:$0xff] }
   0xb   :  { %647 = vmatpush.bf16.msra.mxu1 %v1151_v9  ;;  %v1155_v26 = vld [vmem:[%s1531_s1 + $0x88] sm:$0xff]  ;;  %v1154_v30 = vld [vmem:[%s1531_s1 + $0x80] sm:$0xff]  ;;  %v1185_v46 = vld [vmem:[%s1531_s1 + $0x178] sm:$0xff] }
   0xc   :  { %666 = vmatpush.bf16.msra.mxu2 %v1159_v10  ;;  %v1163_v27 = vld [vmem:[%s1531_s1 + $0xc8] sm:$0xff]  ;;  %v1162_v31 = vld [vmem:[%s1531_s1 + $0xc0] sm:$0xff]  ;;  %v1201_v47 = vld [vmem:[%s1531_s1 + $0x1f8] sm:$0xff] }
   0xd   :  { %685 = vmatpush.bf16.msra.mxu3 %v1167_v11  ;;  %v804_v32 = vld [vmem:[%s1532_s0] sm:$0xf]  ;;  %v1122_v34 = vld [vmem:[%s1532_s0 + $0x4] sm:$0xf]  ;;  %v812_v36 = vld [vmem:[%s1532_s0 + $0x8] sm:$0xf] }
   0xe   :  { %629 = vmatpush.bf16.msra.mxu0 %v1142_v12  ;;  %v1126_v33 = vld [vmem:[%s1532_s0 + $0x1c] sm:$0xf0]  ;;  %v806_v35 = vld [vmem:[%s1532_s0 + $0x20] sm:$0xf0]  ;;  %v1127_v37 = vld [vmem:[%s1532_s0 + $0x24] sm:$0xf0] }
   0xf   :  { %648 = vmatpush.bf16.msra.mxu1 %v1150_v13  ;;  %v1123_v38 = vld [vmem:[%s1532_s0 + $0xc] sm:$0xf]  ;;  %v805_v42 = vor.u32 %v1126_v33, %v804_v32  ;;  %v809_v43 = vor.u32 %v1122_v34, %v806_v35  ;;  %v813_v44 = vor.u32 %v1127_v37, %v812_v36  ;;  %v1192_v48 = vld [vmem:[%s1531_s1 + $0x1b0] sm:$0xff]  ;;  %v1190_v56 = vld [vmem:[%s1531_s1 + $0x1a0] sm:$0xff] }
  0x10   :  { %667 = vmatpush.bf16.msra.mxu2 %v1158_v14  ;;  %v814_v39 = vld [vmem:[%s1532_s0 + $0x28] sm:$0xf0]  ;;  %v1176_v49 = vld [vmem:[%s1531_s1 + $0x130] sm:$0xff]  ;;  %v1174_v57 = vld [vmem:[%s1531_s1 + $0x120] sm:$0xff] }
  0x11   :  { %686 = vmatpush.bf16.msra.mxu3 %v1166_v15  ;;  %v817_v45 = vor.u32 %v1123_v38, %v814_v39  ;;  %v1184_v50 = vld [vmem:[%s1531_s1 + $0x170] sm:$0xff]  ;;  %v1191_v52 = vld [vmem:[%s1531_s1 + $0x1a8] sm:$0xff]  ;;  %v1182_v58 = vld [vmem:[%s1531_s1 + $0x160] sm:$0xff] }
  0x12   :  { %630 = vmatpush.bf16.msra.mxu0 %v1141_v16  ;;  %v1200_v51 = vld [vmem:[%s1531_s1 + $0x1f0] sm:$0xff]  ;;  %v1175_v53 = vld [vmem:[%s1531_s1 + $0x128] sm:$0xff]  ;;  %v1198_v59 = vld [vmem:[%s1531_s1 + $0x1e0] sm:$0xff] }
  0x13   :  { %649 = vmatpush.bf16.msra.mxu1 %v1149_v17  ;;  %v1183_v54 = vld [vmem:[%s1531_s1 + $0x168] sm:$0xff]  ;;  %v836_v60 = vld [vmem:[%s1532_s0 + $0x40] sm:$0xf]  ;;  %v1130_v62 = vld [vmem:[%s1532_s0 + $0x44] sm:$0xf] }
  0x14   :  { %668 = vmatpush.bf16.msra.mxu2 %v1157_v18  ;;  %v1199_v55 = vld [vmem:[%s1531_s1 + $0x1e8] sm:$0xff]  ;;  %v1134_v61 = vld [vmem:[%s1532_s0 + $0x5c] sm:$0xf0]  ;;  %v838_v63 = vld [vmem:[%s1532_s0 + $0x60] sm:$0xf0] }
  0x15   :  { %687 = vmatpush.bf16.msra.mxu3 %v1165_v19  ;;  %v844_v0 = vld [vmem:[%s1532_s0 + $0x48] sm:$0xf]  ;;  %v1131_v2 = vld [vmem:[%s1532_s0 + $0x4c] sm:$0xf]  ;;  %v1189_v4 = vld [vmem:[%s1531_s1 + $0x198] sm:$0xff]  ;;  %v837_v6 = vor.u32 %v1134_v61, %v836_v60  ;;  %v841_v7 = vor.u32 %v1130_v62, %v838_v63 }
  0x16   :  { %631 = vmatpush.bf16.msra.mxu0 %v1140_v20  ;;  %v1135_v1 = vld [vmem:[%s1532_s0 + $0x64] sm:$0xf0]  ;;  %v846_v3 = vld [vmem:[%s1532_s0 + $0x68] sm:$0xf0]  ;;  %v1173_v5 = vld [vmem:[%s1531_s1 + $0x118] sm:$0xff] }
  0x17   :  { %650 = vmatpush.bf16.msra.mxu1 %v1148_v21  ;;  %v845_v8 = vor.u32 %v1135_v1, %v844_v0  ;;  %v849_v9 = vor.u32 %v1131_v2, %v846_v3  ;;  %v1181_v10 = vld [vmem:[%s1531_s1 + $0x158] sm:$0xff]  ;;  %v1188_v12 = vld [vmem:[%s1531_s1 + $0x190] sm:$0xff]  ;;  %v1187_v16 = vld [vmem:[%s1531_s1 + $0x188] sm:$0xff] }
  0x18   :  { %669 = vmatpush.bf16.msra.mxu2 %v1156_v22  ;;  %v1197_v11 = vld [vmem:[%s1531_s1 + $0x1d8] sm:$0xff]  ;;  %v1172_v13 = vld [vmem:[%s1531_s1 + $0x110] sm:$0xff]  ;;  %v1171_v17 = vld [vmem:[%s1531_s1 + $0x108] sm:$0xff] }
  0x19   :  { %688 = vmatpush.bf16.msra.mxu3 %v1164_v23  ;;  %v1180_v14 = vld [vmem:[%s1531_s1 + $0x150] sm:$0xff]  ;;  %v1179_v18 = vld [vmem:[%s1531_s1 + $0x148] sm:$0xff]  ;;  %v1186_v20 = vld [vmem:[%s1531_s1 + $0x180] sm:$0xff] }
  0x1a   :  { %632 = vmatpush.bf16.msra.mxu0 %v1139_v24  ;;  %v1196_v15 = vld [vmem:[%s1531_s1 + $0x1d0] sm:$0xff]  ;;  %v1195_v19 = vld [vmem:[%s1531_s1 + $0x1c8] sm:$0xff]  ;;  %v1170_v21 = vld [vmem:[%s1531_s1 + $0x100] sm:$0xff] }
  0x1b   :  { %651 = vmatpush.bf16.msra.mxu1 %v1147_v25  ;;  %v1178_v22 = vld [vmem:[%s1531_s1 + $0x140] sm:$0xff]  ;;  %v820_v24 = vld [vmem:[%s1532_s0 + $0x10] sm:$0xf]  ;;  %v1132_v38 = vld [vmem:[%s1532_s0 + $0x54] sm:$0xf] }
  0x1c   :  { %670 = vmatpush.bf16.msra.mxu2 %v1155_v26  ;;  %v1194_v23 = vld [vmem:[%s1531_s1 + $0x1c0] sm:$0xff]  ;;  %v1128_v25 = vld [vmem:[%s1532_s0 + $0x2c] sm:$0xf0]  ;;  %v1124_v26 = vld [vmem:[%s1532_s0 + $0x14] sm:$0xf] }
  0x1d   :  { %689 = vmatpush.bf16.msra.mxu3 %v1163_v27  ;;  %v822_v27 = vld [vmem:[%s1532_s0 + $0x30] sm:$0xf0]  ;;  %v821_v32 = vor.u32 %v1128_v25, %v820_v24  ;;  %v852_v36 = vld [vmem:[%s1532_s0 + $0x50] sm:$0xf] }
  0x1e   :  { %633 = vmatpush.bf16.msra.mxu0 %v1138_v28  ;;  %v828_v28 = vld [vmem:[%s1532_s0 + $0x18] sm:$0xf]  ;;  %v825_v33 = vor.u32 %v1124_v26, %v822_v27  ;;  %v1136_v37 = vld [vmem:[%s1532_s0 + $0x6c] sm:$0xf0]  ;;  %v854_v39 = vld [vmem:[%s1532_s0 + $0x70] sm:$0xf0] }
  0x1f   :  { %652 = vmatpush.bf16.msra.mxu1 %v1146_v29  ;;  %v1129_v29 = vld [vmem:[%s1532_s0 + $0x34] sm:$0xf0] }
  0x20   :  { %671 = vmatpush.bf16.msra.mxu2 %v1154_v30  ;;  %v1125_v30 = vld [vmem:[%s1532_s0 + $0x1c] sm:$0xf]  ;;  %v829_v34 = vor.u32 %v1129_v29, %v828_v28 }
  0x21   :  { %690 = vmatpush.bf16.msra.mxu3 %v1162_v31  ;;  %634 = vmatmul.bf16.vlgmr.msra.gmra.mxu0 %v805_v42  ;;  %v830_v31 = vld [vmem:[%s1532_s0 + $0x38] sm:$0xf0] }
  0x22   :  { %702 = vmatpush.bf16.msrb.mxu0 %v1177_v41  ;;  %653 = vmatmul.bf16.vlgmr.msra.gmra.mxu1 %v809_v43  ;;  %v833_v35 = vor.u32 %v1125_v30, %v830_v31  ;;  %v1137_v41 = vld [vmem:[%s1532_s0 + $0x74] sm:$0xf0]  ;;  %v1133_v42 = vld [vmem:[%s1532_s0 + $0x5c] sm:$0xf] }
  0x23   :  { %672 = vmatmul.bf16.vlgmr.msra.gmra.mxu2 %v813_v44  ;;  %721 = vmatpush.bf16.msrb.mxu1 %v1185_v46  ;;  %v862_v43 = vld [vmem:[%s1532_s0 + $0x78] sm:$0xf0]  ;;  %v853_v44 = vor.u32 %v1136_v37, %v852_v36 }
  0x24   :  { %740 = vmatpush.bf16.msrb.mxu2 %v1193_v40  ;;  %691 = vmatmul.bf16.vlgmr.msra.gmra.mxu3 %v817_v45  ;;  %v860_v40 = vld [vmem:[%s1532_s0 + $0x58] sm:$0xf]  ;;  %v857_v45 = vor.u32 %v1132_v38, %v854_v39 }
  0x25   :  { %759 = vmatpush.bf16.msrb.mxu3 %v1201_v47  ;;  %v861_v46 = vor.u32 %v1137_v41, %v860_v40  ;;  %v865_v47 = vor.u32 %v1133_v42, %v862_v43 }
  0x26   :  { %703 = vmatpush.bf16.msrb.mxu0 %v1176_v49 }
  0x27   :  { %722 = vmatpush.bf16.msrb.mxu1 %v1184_v50 }
  0x28   :  { %741 = vmatpush.bf16.msrb.mxu2 %v1192_v48 }
  0x29   :  { %760 = vmatpush.bf16.msrb.mxu3 %v1200_v51 }
  0x2a   :  { %704 = vmatpush.bf16.msrb.mxu0 %v1175_v53 }
  0x2b   :  { %723 = vmatpush.bf16.msrb.mxu1 %v1183_v54 }
  0x2c   :  { %742 = vmatpush.bf16.msrb.mxu2 %v1191_v52 }
  0x2d   :  { %761 = vmatpush.bf16.msrb.mxu3 %v1199_v55 }
  0x2e   :  { %705 = vmatpush.bf16.msrb.mxu0 %v1174_v57 }
  0x2f   :  { %724 = vmatpush.bf16.msrb.mxu1 %v1182_v58  ;;  %v1213_v58 = vld [vmem:[%s1533_s2] ss:$0 sm:$0xff] }
  0x30   :  { %743 = vmatpush.bf16.msrb.mxu2 %v1190_v56 }
  0x31   :  { %762 = vmatpush.bf16.msrb.mxu3 %v1198_v59  ;;  %639 = vmatmul.bf16.gmra.mxu0 %v837_v6 }
  0x32   :  { %706 = vmatpush.bf16.msrb.mxu0 %v1173_v5  ;;  %658 = vmatmul.bf16.gmra.mxu1 %v841_v7 }
  0x33   :  { %677 = vmatmul.bf16.gmra.mxu2 %v845_v8  ;;  %725 = vmatpush.bf16.msrb.mxu1 %v1181_v10 }
  0x34   :  { %744 = vmatpush.bf16.msrb.mxu2 %v1189_v4  ;;  %696 = vmatmul.bf16.gmra.mxu3 %v849_v9 }
  0x35   :  { %763 = vmatpush.bf16.msrb.mxu3 %v1197_v11 }
  0x36   :  { %707 = vmatpush.bf16.msrb.mxu0 %v1172_v13 }
  0x37   :  { %726 = vmatpush.bf16.msrb.mxu1 %v1180_v14 }
  0x38   :  { %745 = vmatpush.bf16.msrb.mxu2 %v1188_v12 }
  0x39   :  { %764 = vmatpush.bf16.msrb.mxu3 %v1196_v15 }
  0x3a   :  { %708 = vmatpush.bf16.msrb.mxu0 %v1171_v17 }
  0x3b   :  { %727 = vmatpush.bf16.msrb.mxu1 %v1179_v18 }
  0x3c   :  { %746 = vmatpush.bf16.msrb.mxu2 %v1187_v16 }
  0x3d   :  { %765 = vmatpush.bf16.msrb.mxu3 %v1195_v19 }
  0x3e   :  { %709 = vmatpush.bf16.msrb.mxu0 %v1170_v21 }
  0x3f   :  { %728 = vmatpush.bf16.msrb.mxu1 %v1178_v22 }
  0x40   :  { %747 = vmatpush.bf16.msrb.mxu2 %v1186_v20 }
  0x41   :  { %766 = vmatpush.bf16.msrb.mxu3 %v1194_v23  ;;  %710 = vmatmul.bf16.vlgmr.msrb.gmra.mxu0 %v821_v32 }
  0x42   :  { %729 = vmatmul.bf16.vlgmr.msrb.gmra.mxu1 %v825_v33 }
  0x43   :  { %748 = vmatmul.bf16.vlgmr.msrb.gmra.mxu2 %v829_v34 }
  0x44   :  { %767 = vmatmul.bf16.vlgmr.msrb.gmra.mxu3 %v833_v35 }
  0x51   :  { %715 = vmatmul.bf16.gmra.mxu0 %v853_v44 }
  0x52   :  { %734 = vmatmul.bf16.gmra.mxu1 %v857_v45 }
  0x53   :  { %753 = vmatmul.bf16.gmra.mxu2 %v861_v46 }
  0x54   :  { %772 = vmatmul.bf16.gmra.mxu3 %v865_v47 }
  0x9e   :  { %v635_v48 = vpop.f32.mrf.mxu0 }
  0x9f   :  { %v654_v49 = vpop.f32.mrf.mxu1  ;;  %v636_v59 = vadd.f32 %v1213_v58, %v635_v48 }
  0xa1   :  { %v655_v0 = vadd.f32 %v654_v49, %v636_v59 }
  0xa6   :  { %v673_v50 = vpop.f32.mrf.mxu2  ;;  %v637_v52 = vpop.f32.mrf.mxu0 }
  0xa7   :  { %v692_v51 = vpop.f32.mrf.mxu3  ;;  %v656_v53 = vpop.f32.mrf.mxu1  ;;  %v674_v1 = vadd.f32 %v673_v50, %v655_v0  ;;  %v638_v2 = vadd.f32 %v1213_v58, %v637_v52 }
  0xa9   :  { %v693_v7 = vadd.f32 %v692_v51, %v674_v1  ;;  %v657_v8 = vadd.f32 %v656_v53, %v638_v2 }
  0xae   :  { %v675_v54 = vpop.f32.mrf.mxu2  ;;  %v640_v56 = vpop.f32.mrf.mxu0 }
  0xaf   :  { %v694_v55 = vpop.f32.mrf.mxu3  ;;  %v659_v57 = vpop.f32.mrf.mxu1  ;;  %v676_v9 = vadd.f32 %v675_v54, %v657_v8  ;;  %v641_v11 = vadd.f32 %v1213_v58, %v640_v56 }
  0xb1   :  { %v695_v13 = vadd.f32 %v694_v55, %v676_v9  ;;  %v660_v18 = vadd.f32 %v659_v57, %v641_v11 }
  0xb6   :  { %v678_v60 = vpop.f32.mrf.mxu2  ;;  %v642_v62 = vpop.f32.mrf.mxu0 }
  0xb7   :  { %v697_v61 = vpop.f32.mrf.mxu3  ;;  %v661_v63 = vpop.f32.mrf.mxu1  ;;  %v679_v21 = vadd.f32 %v678_v60, %v660_v18  ;;  %v643_v22 = vadd.f32 %v1213_v58, %v642_v62 }
  0xb9   :  { %v698_v29 = vadd.f32 %v697_v61, %v679_v21  ;;  %v662_v30 = vadd.f32 %v661_v63, %v643_v22 }
  0xbe   :  { %v680_v3 = vpop.f32.mrf.mxu2  ;;  %v711_v5 = vpop.f32.mrf.mxu0 }
  0xbf   :  { %v699_v4 = vpop.f32.mrf.mxu3  ;;  %v730_v6 = vpop.f32.mrf.mxu1  ;;  %v712_v10 = vadd.f32 %v711_v5, %v693_v7  ;;  %v681_v34 = vadd.f32 %v680_v3, %v662_v30 }
  0xc1   :  { %v731_v14 = vadd.f32 %v730_v6, %v712_v10  ;;  %v700_v41 = vadd.f32 %v699_v4, %v681_v34 }
  0xc6   :  { %v749_v12 = vpop.f32.mrf.mxu2  ;;  %v713_v16 = vpop.f32.mrf.mxu0 }
  0xc7   :  { %v768_v15 = vpop.f32.mrf.mxu3  ;;  %v732_v17 = vpop.f32.mrf.mxu1  ;;  %v750_v19 = vadd.f32 %v749_v12, %v731_v14  ;;  %v714_v20 = vadd.f32 %v713_v16, %v695_v13 }
  0xc9   :  { %v769_v23 = vadd.f32 %v768_v15, %v750_v19  ;;  %v733_v24 = vadd.f32 %v732_v17, %v714_v20 }
  0xcb   :  { %v782_v31 = vmul.f32 0.2, %v769_v23  ;;  %vm778_vm0 = vcmp.gt.f32.partialorder %v769_v23, 0.0 }
  0xcd   :  { %v786_v37 = vsel %vm778_vm0, %v769_v23, %v782_v31 }
  0xce   :  { %v751_v25 = vpop.f32.mrf.mxu2  ;;  %v716_v28 = vpop.f32.mrf.mxu0 }
  0xcf   :  { %v752_v26 = vadd.f32 %v751_v25, %v733_v24  ;;  %v770_v27 = vpop.f32.mrf.mxu3  ;;  %v735_v33 = vpop.f32.mrf.mxu1  ;;  %v717_v36 = vadd.f32 %v716_v28, %v698_v29 }
  0xd1   :  { %v771_v32 = vadd.f32 %v770_v27, %v752_v26  ;;  %v736_v42 = vadd.f32 %v735_v33, %v717_v36 }
  0xd3   :  { %vm779_vm1 = vcmp.gt.f32.partialorder %v771_v32, 0.0  ;;  %v783_v35 = vmul.f32 0.2, %v771_v32 }
  0xd5   :  { %v787_v38 = vsel %vm779_vm1, %v771_v32, %v783_v35 }
  0xd6   :  { %v1205_v39 = vpack.c.bf16 %v787_v38, %v786_v37  ;;  %v754_v40 = vpop.f32.mrf.mxu2  ;;  %v718_v44 = vpop.f32.mrf.mxu0 }
  0xd7   :  { %v773_v43 = vpop.f32.mrf.mxu3  ;;  %v755_v45 = vadd.f32 %v754_v40, %v736_v42  ;;  %v719_v46 = vadd.f32 %v718_v44, %v700_v41  ;;  %v737_v47 = vpop.f32.mrf.mxu1 }
  0xd8   :  { %1206 = vst [vmem:[%s1534_s3] sm:$0xff] %v1205_v39  }
  0xd9   :  { %v774_v48 = vadd.f32 %v773_v43, %v755_v45  ;;  %v738_v49 = vadd.f32 %v737_v47, %v719_v46 }
  0xdb   :  { %v784_v53 = vmul.f32 0.2, %v774_v48  ;;  %vm780_vm2 = vcmp.gt.f32.partialorder %v774_v48, 0.0 }
  0xdd   :  { %v788_v56 = vsel %vm780_vm2, %v774_v48, %v784_v53 }
  0xde   :  { %v756_v50 = vpop.f32.mrf.mxu2 }
  0xdf   :  { %v757_v51 = vadd.f32 %v756_v50, %v738_v49  ;;  %v775_v52 = vpop.f32.mrf.mxu3 }
  0xe1   :  { %v776_v54 = vadd.f32 %v775_v52, %v757_v51 }
  0xe3   :  { %vm781_vm3 = vcmp.gt.f32.partialorder %v776_v54, 0.0  ;;  %v785_v55 = vmul.f32 0.2, %v776_v54 }
  0xe5   :  { %v789_v57 = vsel %vm781_vm3, %v776_v54, %v785_v55 }
  0xe6   :  { %v1210_v58 = vpack.c.bf16 %v789_v57, %v788_v56 }
  0xe8   :  { %1212 = vst [vmem:[%s1534_s3 + $0x8] sm:$0xff] %v1210_v58  }

// kernel: patch_discriminator.5
= control target key start
LH: loop header
LB: loop body
LE: loop exit
PB: predicated region body
PF: predicated region fallthrough
CT: control target
= control target key end

     0   :  { %s635_s0 = inlined_call_operand.vmem [shape: bf16[18,2048], index: 0, kind: input, shape index: {}]   ;;  %s636_s1 = inlined_call_operand.vmem [shape: bf16[1,2048], index: 1, kind: input, shape index: {}]   ;;  %s637_s2 = inlined_call_operand.<no memory space> [shape: f32[1,1], index: 2, kind: input, shape index: {}]   ;;  %s638_s3 = inlined_call_operand.vmem [shape: f32[18,1], index: 3, kind: output, shape index: {}]  }
   0x1   :  { %v8_v0 = vstv %s637_s2 }
   0x2   :  { %9 = vst [vmem:[#allocation2] sm:$0x1] %v8_v0 }
   0x3   :  { %v112_v1 = vld [vmem:[%s636_s1] sm:$0xff]  ;;  %v17_v6 = vld [vmem:[%s635_s0 + $0x8] sm:$0xff]  ;;  %v18_v7 = vld [vmem:[%s635_s0 + $0x10] sm:$0xff]  ;;  %vm310_vm0 = vcmask 7168  }
   0x4   :  { %v114_v2 = vunpack.c.l.bf16 %v112_v1  ;;  %v16_v3 = vld [vmem:[%s635_s0] sm:$0xff]  ;;  %v115_v8 = vunpack.c.h.bf16 %v112_v1  ;;  %v403_v10 = vld [vmem:[%s635_s0 + $0x18] sm:$0xff]  ;;  %v413_v13 = vld [vmem:[%s635_s0 + $0x28] sm:$0xff]  ;;  %v50_v18 = vunpack.c.l.bf16 %v17_v6  ;;  %v51_v19 = vunpack.c.h.bf16 %v17_v6 }
   0x5   :  { %v48_v11 = vunpack.c.l.bf16 %v16_v3  ;;  %v408_v12 = vld [vmem:[%s635_s0 + $0x20] sm:$0xff]  ;;  %v49_v14 = vunpack.c.h.bf16 %v16_v3  ;;  %v52_v20 = vunpack.c.l.bf16 %v18_v7  ;;  %v53_v21 = vunpack.c.h.bf16 %v18_v7  ;;  %v422_v22 = vld [vmem:[%s635_s0 + $0x30] sm:$0xff]  ;;  %v427_v23 = vld [vmem:[%s635_s0 + $0x38] sm:$0xff] }
   0x6   :  { %v122_v4 = vperm.slane %v114_v2, 0  ;;  %v123_v5 = vperm.slane %v114_v2, 2  ;;  %v124_v9 = vperm.slane %v114_v2, 4  ;;  %v125_v15 = vperm.slane %v114_v2, 6  ;;  %v113_v26 = vld [vmem:[%s636_s1 + $0x8] sm:$0xff]  ;;  %v32_v37 = vld [vmem:[%s635_s0 + $0x80] sm:$0xff] }
   0x7   :  { %v54_v24 = vunpack.c.l.bf16 %v403_v10  ;;  %v55_v25 = vunpack.c.h.bf16 %v403_v10  ;;  %v126_v27 = vperm.slane %v115_v8, 0  ;;  %v56_v29 = vunpack.c.l.bf16 %v408_v12  ;;  %v33_v42 = vld [vmem:[%s635_s0 + $0x88] sm:$0xff]  ;;  %v34_v3 = vld [vmem:[%s635_s0 + $0x90] sm:$0xff] }
   0x8   :  { %v415_v16 = vperm.slane %v122_v4, 0  ;;  %v417_v17 = vperm.slane %v123_v5, 0  ;;  %v434_v28 = vperm.slane %v124_v9, 0  ;;  %v57_v30 = vunpack.c.h.bf16 %v408_v12  ;;  %v36_v12 = vld [vmem:[%s635_s0 + $0xa0] sm:$0xff] }
   0x9   :  { %v58_v31 = vunpack.c.l.bf16 %v413_v13  ;;  %v59_v32 = vunpack.c.h.bf16 %v413_v13  ;;  %v127_v33 = vperm.slane %v115_v8, 2  ;;  %v440_v34 = vperm.slane %v125_v15, 0 }
   0xa   :  { %v170_v35 = vmul.f32 %v415_v16, %v48_v11  ;;  %v171_v36 = vmul.f32 %v417_v17, %v49_v14  ;;  %v60_v38 = vunpack.c.l.bf16 %v422_v22  ;;  %v61_v39 = vunpack.c.h.bf16 %v422_v22  ;;  %v26_v22 = vld [vmem:[%s635_s0 + $0x50] sm:$0xff] }
   0xb   :  { %v62_v40 = vunpack.c.l.bf16 %v427_v23  ;;  %v116_v41 = vunpack.c.l.bf16 %v113_v26  ;;  %v63_v43 = vunpack.c.h.bf16 %v427_v23  ;;  %v128_v44 = vperm.slane %v115_v8, 4  ;;  %v545_v23 = vld [vmem:[%s635_s0 + $0xb8] sm:$0xff] }
   0xc   :  { %v454_v45 = vperm.slane %v126_v27, 0  ;;  %v172_v46 = vmul.f32 %v434_v28, %v50_v18  ;;  %v117_v47 = vunpack.c.h.bf16 %v113_v26  ;;  %v129_v48 = vperm.slane %v115_v8, 6 }
   0xd   :  { %v80_v49 = vunpack.c.l.bf16 %v32_v37  ;;  %v81_v50 = vunpack.c.h.bf16 %v32_v37  ;;  %v457_v51 = vperm.slane %v127_v33, 0  ;;  %v173_v52 = vmul.f32 %v440_v34, %v51_v19  ;;  %v35_v33 = vld [vmem:[%s635_s0 + $0x98] sm:$0xff] }
   0xe   :  { %v234_v53 = vadd.f32 %v171_v36, %v170_v35  ;;  %v82_v54 = vunpack.c.l.bf16 %v33_v42  ;;  %v130_v55 = vperm.slane %v116_v41, 0  ;;  %v131_v56 = vperm.slane %v116_v41, 2 }
   0xf   :  { %v132_v57 = vperm.slane %v116_v41, 4  ;;  %v83_v58 = vunpack.c.h.bf16 %v33_v42  ;;  %v133_v59 = vperm.slane %v116_v41, 6  ;;  %v460_v60 = vperm.slane %v128_v44, 0  ;;  %v24_v41 = vld [vmem:[%s635_s0 + $0x40] sm:$0xff] }
  0x10   :  { %v174_v61 = vmul.f32 %v454_v45, %v52_v20  ;;  %v235_v62 = vadd.f32 %v234_v53, %v172_v46  ;;  %v134_v63 = vperm.slane %v117_v47, 0  ;;  %v135_v0 = vperm.slane %v117_v47, 2 }
  0x11   :  { %v136_v1 = vperm.slane %v117_v47, 4  ;;  %v463_v2 = vperm.slane %v129_v48, 0  ;;  %v175_v4 = vmul.f32 %v457_v51, %v53_v21  ;;  %v202_v6 = vmul.f32 %v415_v16, %v80_v49 }
  0x12   :  { %v236_v5 = vadd.f32 %v235_v62, %v173_v52  ;;  %v203_v7 = vmul.f32 %v417_v17, %v81_v50  ;;  %v137_v8 = vperm.slane %v117_v47, 6  ;;  %v471_v9 = vperm.slane %v130_v55, 0  ;;  %v25_v52 = vld [vmem:[%s635_s0 + $0x48] sm:$0xff] }
  0x13   :  { %v473_v10 = vperm.slane %v131_v56, 0  ;;  %v475_v11 = vperm.slane %v132_v57, 0  ;;  %v176_v14 = vmul.f32 %v460_v60, %v54_v24  ;;  %v84_v18 = vunpack.c.l.bf16 %v34_v3  ;;  %v37_v62 = vld [vmem:[%s635_s0 + $0xa8] sm:$0xff] }
  0x14   :  { %v237_v15 = vadd.f32 %v236_v5, %v174_v61  ;;  %v204_v19 = vmul.f32 %v434_v28, %v82_v54  ;;  %v479_v20 = vperm.slane %v133_v59, 0  ;;  %v481_v21 = vperm.slane %v134_v63, 0 }
  0x15   :  { %v483_v26 = vperm.slane %v135_v0, 0  ;;  %v177_v27 = vmul.f32 %v463_v2, %v55_v25  ;;  %v85_v36 = vunpack.c.h.bf16 %v34_v3  ;;  %v205_v24 = vmul.f32 %v440_v34, %v83_v58 }
  0x16   :  { %v238_v35 = vadd.f32 %v237_v15, %v175_v4  ;;  %v268_v37 = vadd.f32 %v203_v7, %v202_v6  ;;  %v493_v42 = vperm.slane %v136_v1, 0  ;;  %v495_v44 = vperm.slane %v137_v8, 0 }
  0x17   :  { %v178_v25 = vmul.f32 %v471_v9, %v56_v29  ;;  %v179_v46 = vmul.f32 %v473_v10, %v57_v30  ;;  %v86_v48 = vunpack.c.l.bf16 %v35_v33  ;;  %v206_v49 = vmul.f32 %v454_v45, %v84_v18 }
  0x18   :  { %v239_v47 = vadd.f32 %v238_v35, %v176_v14  ;;  %v269_v50 = vadd.f32 %v268_v37, %v204_v19  ;;  %v180_v53 = vmul.f32 %v475_v11, %v58_v31  ;;  %v181_v29 = vmul.f32 %v479_v20, %v59_v32 }
  0x19   :  { %v64_v30 = vunpack.c.l.bf16 %v24_v41  ;;  %v65_v54 = vunpack.c.h.bf16 %v24_v41  ;;  %v87_v56 = vunpack.c.h.bf16 %v35_v33  ;;  %v207_v57 = vmul.f32 %v457_v51, %v85_v36  ;;  %v27_v36 = vld [vmem:[%s635_s0 + $0x58] sm:$0xff] }
  0x1a   :  { %v240_v55 = vadd.f32 %v239_v47, %v177_v27  ;;  %v270_v58 = vadd.f32 %v269_v50, %v205_v24  ;;  %v182_v59 = vmul.f32 %v481_v21, %v60_v38  ;;  %v183_v13 = vmul.f32 %v483_v26, %v61_v39  ;;  %v38_v39 = vld [vmem:[%s635_s0 + $0xb0] sm:$0xff]  ;;  %v40_v50 = vld [vmem:[%s635_s0 + $0xc0] sm:$0xff] }
  0x1b   :  { %v184_v31 = vmul.f32 %v493_v42, %v62_v40  ;;  %v66_v32 = vunpack.c.l.bf16 %v25_v52  ;;  %v88_v63 = vunpack.c.l.bf16 %v36_v12  ;;  %v208_v0 = vmul.f32 %v460_v60, %v86_v48 }
  0x1c   :  { %v241_v61 = vadd.f32 %v240_v55, %v178_v25  ;;  %v271_v1 = vadd.f32 %v270_v58, %v206_v49  ;;  %v185_v38 = vmul.f32 %v495_v44, %v63_v43  ;;  %v67_v40 = vunpack.c.h.bf16 %v25_v52  ;;  %v41_v58 = vld [vmem:[%s635_s0 + $0xc8] sm:$0xff] }
  0x1d   :  { %v186_v3 = vmul.f32 %v415_v16, %v64_v30  ;;  %v187_v4 = vmul.f32 %v417_v17, %v65_v54  ;;  %v89_v6 = vunpack.c.h.bf16 %v36_v12  ;;  %v209_v7 = vmul.f32 %v463_v2, %v87_v56 }
  0x1e   :  { %v242_v5 = vadd.f32 %v241_v61, %v179_v46  ;;  %v272_v8 = vadd.f32 %v271_v1, %v207_v57  ;;  %v90_v43 = vunpack.c.l.bf16 %v37_v62  ;;  %v91_v14 = vunpack.c.h.bf16 %v37_v62 }
  0x1f   :  { %v68_v15 = vunpack.c.l.bf16 %v26_v22  ;;  %v188_v18 = vmul.f32 %v434_v28, %v66_v32  ;;  %v92_v27 = vunpack.c.l.bf16 %v38_v39  ;;  %v210_v33 = vmul.f32 %v471_v9, %v88_v63 }
  0x20   :  { %v243_v19 = vadd.f32 %v242_v5, %v180_v53  ;;  %v273_v35 = vadd.f32 %v272_v8, %v208_v0  ;;  %v93_v24 = vunpack.c.h.bf16 %v38_v39  ;;  %v69_v37 = vunpack.c.h.bf16 %v26_v22  ;;  %v29_v39 = vld [vmem:[%s635_s0 + $0x68] sm:$0xff] }
  0x21   :  { %v189_v41 = vmul.f32 %v440_v34, %v67_v40  ;;  %v251_v25 = vadd.f32 %v187_v4, %v186_v3  ;;  %v94_v47 = vunpack.c.l.bf16 %v545_v23  ;;  %v211_v48 = vmul.f32 %v473_v10, %v89_v6 }
  0x22   :  { %v244_v46 = vadd.f32 %v243_v19, %v181_v29  ;;  %v274_v49 = vadd.f32 %v273_v35, %v209_v7  ;;  %v95_v52 = vunpack.c.h.bf16 %v545_v23  ;;  %v70_v53 = vunpack.c.l.bf16 %v27_v36  ;;  %v28_v29 = vld [vmem:[%s635_s0 + $0x60] sm:$0xff] }
  0x23   :  { %v190_v12 = vmul.f32 %v454_v45, %v68_v15  ;;  %v252_v30 = vadd.f32 %v251_v25, %v188_v18  ;;  %v212_v55 = vmul.f32 %v475_v11, %v90_v43  ;;  %v71_v57 = vunpack.c.h.bf16 %v27_v36 }
  0x24   :  { %v245_v54 = vadd.f32 %v244_v46, %v182_v59  ;;  %v275_v56 = vadd.f32 %v274_v49, %v210_v33  ;;  %v191_v32 = vmul.f32 %v457_v51, %v69_v37  ;;  %v96_v62 = vunpack.c.l.bf16 %v40_v50 }
  0x25   :  { %v253_v61 = vadd.f32 %v252_v30, %v189_v41  ;;  %v97_v63 = vunpack.c.h.bf16 %v40_v50  ;;  %v213_v59 = vmul.f32 %v479_v20, %v91_v14  ;;  %v214_v1 = vmul.f32 %v481_v21, %v92_v27 }
  0x26   :  { %v246_v0 = vadd.f32 %v245_v54, %v183_v13  ;;  %v276_v22 = vadd.f32 %v275_v56, %v211_v48  ;;  %v72_v40 = vunpack.c.l.bf16 %v28_v29  ;;  %v192_v3 = vmul.f32 %v460_v60, %v70_v53  ;;  %v42_v13 = vld [vmem:[%s635_s0 + $0xd0] sm:$0xff] }
  0x27   :  { %v254_v4 = vadd.f32 %v253_v61, %v190_v12  ;;  %v98_v5 = vunpack.c.l.bf16 %v41_v58  ;;  %v73_v8 = vunpack.c.h.bf16 %v28_v29  ;;  %v193_v23 = vmul.f32 %v463_v2, %v71_v57 }
  0x28   :  { %v247_v6 = vadd.f32 %v246_v0, %v184_v31  ;;  %v277_v7 = vadd.f32 %v276_v22, %v212_v55  ;;  %v99_v14 = vunpack.c.h.bf16 %v41_v58  ;;  %v218_v15 = vmul.f32 %v415_v16, %v96_v62  ;;  %v30_v31 = vld [vmem:[%s635_s0 + $0x70] sm:$0xff] }
  0x29   :  { %v255_v43 = vadd.f32 %v254_v4, %v191_v32  ;;  %v219_v18 = vmul.f32 %v417_v17, %v97_v63  ;;  %v215_v27 = vmul.f32 %v483_v26, %v93_v24  ;;  %v74_v35 = vunpack.c.l.bf16 %v29_v39  ;;  %v43_v24 = vld [vmem:[%s635_s0 + $0xd8] sm:$0xff] }
  0x2a   :  { %v248_v19 = vadd.f32 %v247_v6, %v185_v38  ;;  %v278_v33 = vadd.f32 %v277_v7, %v213_v59  ;;  %v194_v36 = vmul.f32 %v471_v9, %v72_v40  ;;  %v100_v41 = vunpack.c.l.bf16 %v42_v13  ;;  %v45_v6 = vld [vmem:[%s635_s0 + $0xe8] sm:$0xff] }
  0x2b   :  { %v256_v37 = vadd.f32 %v255_v43, %v192_v3  ;;  %v220_v25 = vmul.f32 %v434_v28, %v98_v5  ;;  %v216_v16 = vmul.f32 %v493_v42, %v94_v47  ;;  %v75_v17 = vunpack.c.h.bf16 %v29_v39  ;;  %v31_v47 = vld [vmem:[%s635_s0 + $0x78] sm:$0xff] }
  0x2c   :  { %249 = vadd.xlane.f32.xlu0 %v248_v19  ;;  %v279_v46 = vadd.f32 %v278_v33, %v214_v1  ;;  %v195_v38 = vmul.f32 %v473_v10, %v73_v8  ;;  %v101_v49 = vunpack.c.h.bf16 %v42_v13  ;;  %v221_v50 = vmul.f32 %v440_v34, %v99_v14  ;;  %v46_v19 = vld [vmem:[%s635_s0 + $0xf0] sm:$0xff] }
  0x2d   :  { %v257_v48 = vadd.f32 %v256_v37, %v193_v23  ;;  %v285_v53 = vadd.f32 %v219_v18, %v218_v15  ;;  %v217_v12 = vmul.f32 %v495_v44, %v95_v52  ;;  %v76_v28 = vunpack.c.l.bf16 %v30_v31  ;;  %v44_v52 = vld [vmem:[%s635_s0 + $0xe0] sm:$0xff] }
  0x2e   :  { %v280_v30 = vadd.f32 %v279_v46, %v215_v27  ;;  %v196_v54 = vmul.f32 %v475_v11, %v74_v35  ;;  %v102_v56 = vunpack.c.l.bf16 %v43_v24  ;;  %v222_v29 = vmul.f32 %v454_v45, %v100_v41 }
  0x2f   :  { %v258_v55 = vadd.f32 %v257_v48, %v194_v36  ;;  %v286_v57 = vadd.f32 %v285_v53, %v220_v25  ;;  %v77_v32 = vunpack.c.h.bf16 %v30_v31  ;;  %v197_v34 = vmul.f32 %v479_v20, %v75_v17 }
  0x30   :  { %v281_v58 = vadd.f32 %v280_v30, %v216_v16  ;;  %v103_v62 = vunpack.c.h.bf16 %v43_v24  ;;  %v223_v63 = vmul.f32 %v457_v51, %v101_v49  ;;  %v78_v1 = vunpack.c.l.bf16 %v31_v47 }
  0x31   :  { %v259_v61 = vadd.f32 %v258_v55, %v195_v38  ;;  %v287_v0 = vadd.f32 %v286_v57, %v221_v50  ;;  %v198_v22 = vmul.f32 %v481_v21, %v76_v28  ;;  %v104_v45 = vunpack.c.l.bf16 %v44_v52 }
  0x32   :  { %v282_v59 = vadd.f32 %v281_v58, %v217_v12  ;;  %v224_v40 = vmul.f32 %v460_v60, %v102_v56  ;;  %v79_v4 = vunpack.c.h.bf16 %v31_v47  ;;  %v199_v5 = vmul.f32 %v483_v26, %v77_v32 }
  0x33   :  { %v260_v39 = vadd.f32 %v259_v61, %v196_v54  ;;  %v288_v3 = vadd.f32 %v287_v0, %v222_v29  ;;  %v105_v51 = vunpack.c.h.bf16 %v44_v52  ;;  %v225_v8 = vmul.f32 %v463_v2, %v103_v62 }
  0x34   :  { %283 = vadd.xlane.f32.xlu1 %v282_v59  ;;  %v200_v13 = vmul.f32 %v493_v42, %v78_v1  ;;  %v106_v14 = vunpack.c.l.bf16 %v45_v6  ;;  %v226_v60 = vmul.f32 %v471_v9, %v104_v45  ;;  %v201_v18 = vmul.f32 %v495_v44, %v79_v4  ;;  %v47_v9 = vld [vmem:[%s635_s0 + $0xf8] sm:$0xff] }
  0x35   :  { %v261_v7 = vadd.f32 %v260_v39, %v197_v34  ;;  %v289_v23 = vadd.f32 %v288_v3, %v223_v63  ;;  %v107_v33 = vunpack.c.h.bf16 %v45_v6  ;;  %v227_v35 = vmul.f32 %v473_v10, %v105_v51 }
  0x36   :  { %v108_v36 = vunpack.c.l.bf16 %v46_v19  ;;  %v228_v37 = vmul.f32 %v475_v11, %v106_v14  ;;  %v109_v16 = vunpack.c.h.bf16 %v46_v19  ;;  %v110_v38 = vunpack.c.l.bf16 %v47_v9 }
  0x37   :  { %v262_v43 = vadd.f32 %v261_v7, %v198_v22  ;;  %v290_v15 = vadd.f32 %v289_v23, %v224_v40  ;;  %v229_v46 = vmul.f32 %v479_v20, %v107_v33  ;;  %v111_v48 = vunpack.c.h.bf16 %v47_v9  ;;  %v364_v20 = vld [vmem:[#allocation2] ss:$0 sm:$0xff] }
  0x38   :  { %v230_v24 = vmul.f32 %v481_v21, %v108_v36  ;;  %v231_v49 = vmul.f32 %v483_v26, %v109_v16  ;;  %v232_v11 = vmul.f32 %v493_v42, %v110_v38 }
  0x39   :  { %v263_v27 = vadd.f32 %v262_v43, %v199_v5  ;;  %v291_v31 = vadd.f32 %v290_v15, %v225_v8  ;;  %v233_v12 = vmul.f32 %v495_v44, %v111_v48 }
  0x3b   :  { %v264_v2 = vadd.f32 %v263_v27, %v200_v13  ;;  %v292_v41 = vadd.f32 %v291_v31, %v226_v60 }
  0x3d   :  { %v265_v25 = vadd.f32 %v264_v2, %v201_v18  ;;  %v293_v17 = vadd.f32 %v292_v41, %v227_v35 }
  0x3f   :  { %266 = vadd.xlane.f32.xlu0 %v265_v25  ;;  %v294_v10 = vadd.f32 %v293_v17, %v228_v37 }
  0x41   :  { %v295_v50 = vadd.f32 %v294_v10, %v229_v46 }
  0x43   :  { %v296_v53 = vadd.f32 %v295_v50, %v230_v24 }
  0x45   :  { %v297_v30 = vadd.f32 %v296_v53, %v231_v49 }
  0x47   :  { %v298_v28 = vadd.f32 %v297_v30, %v232_v11 }
  0x49   :  { %v299_v54 = vadd.f32 %v298_v28, %v233_v12 }
  0x4b   :  { %300 = vadd.xlane.f32.xlu1 %v299_v54 }
  0x9f   :  { %v250_v47 = vpop.xlane.xlu0 %249 }
  0xa0   :  { %v306_v55 = vadd.f32 %v364_v20, %v250_v47 }
  0xa2   :  { %311 = vst.msk [vmem:[#allocation3] sm:$0xff] %vm310_vm0, %v306_v55 }
  0xa7   :  { %v284_v21 = vpop.xlane.xlu1 %283 }
  0xa8   :  { %v308_v56 = vadd.f32 %v364_v20, %v284_v21 }
  0xa9   :  { %v349_v29 = vld [vmem:[#allocation3] sm:$0xff] }
  0xaa   :  { %350 = vst [vmem:[%s638_s3] sm:$0xff] %v349_v29 }
  0xab   :  { %313 = vst.msk [vmem:[#allocation3 + $0x10] sm:$0xff] %vm310_vm0, %v308_v56 }
  0xb2   :  { %v353_v26 = vld [vmem:[#allocation3 + $0x10] sm:$0xff]  ;;  %v267_v42 = vpop.xlane.xlu0 %266 }
  0xb3   :  { %354 = vst [vmem:[%s638_s3 + $0x10] sm:$0xff] %v353_v26  ;;  %v307_v44 = vadd.f32 %v364_v20, %v267_v42 }
  0xb5   :  { %312 = vst.msk [vmem:[#allocation3 + $0x8] sm:$0xff] %vm310_vm0, %v307_v44 }
  0xbc   :  { %v351_v57 = vld [vmem:[#allocation3 + $0x8] sm:$0xff] }
  0xbd   :  { %352 = vst [vmem:[%s638_s3 + $0x8] sm:$0xff] %v351_v57 }
  0xbe   :  { %v301_v58 = vpop.xlane.xlu1 %300 }

</bundles_post_ra>
